<compile_context>
chip_gen: v6e
topology: v6e:2x2x1
jax: 0.10.0
libtpu: 0.0.40
codegen_flags: <defaults>
</compile_context>

<pallas_src>
import functools

import jax
import jax.numpy as jnp
from jax.experimental import pallas as pl
from jax.experimental.pallas import tpu as pltpu

_NEG_BIG = -1e30  # exp(-1e30 - m) underflows to exactly 0.0 in f32 (no NaN/inf)


def _round_up(n, m):
    return ((n + m - 1) // m) * m


# ---------------------------------------------------------------------------
# One-shot theta kernel: theta = softmax(W^T, axis=0) == softmax(W, axis=-1)^T
# ---------------------------------------------------------------------------
def _theta_kernel(w_ref, theta_ref):
    w = w_ref[...]                              # (kp, kp) f32, -1e30 padded cols
    m = jnp.max(w, axis=-1, keepdims=True)      # lane-axis reduction (XLU)
    e = jnp.exp(w - m)                          # EUP
    s = jnp.sum(e, axis=-1, keepdims=True)
    theta_ref[...] = jnp.transpose(e / s)       # exact divide; one aligned vxpose


def prepare_theta(w):
    """w: (k, k) nn.Linear weight. Returns theta = softmax(W^T, axis=0), (k, k).

    Depends only on the weights — compute once per weight update and reuse;
    the apply kernel takes it as a plain input.
    """
    k = w.shape[0]
    assert w.shape == (k, k)
    k_pad = _round_up(k, 128)
    # Pad with a large negative so padded in-feature columns contribute
    # exp -> 0 to every real row's softmax denominator (exact semantics).
    w_p = jnp.pad(w.astype(jnp.float32),
                  ((0, k_pad - k), (0, k_pad - k)),
                  constant_values=_NEG_BIG)
    theta_full = pl.pallas_call(
        _theta_kernel,
        out_shape=jax.ShapeDtypeStruct((k_pad, k_pad), jnp.float32),
        cost_estimate=pl.CostEstimate(
            flops=4 * k_pad * k_pad,
            transcendentals=k_pad * k_pad,
            bytes_accessed=8 * k_pad * k_pad),
    )(w_p)
    # theta itself is tiny (k*k*4 bytes); slicing it here is negligible and
    # keeps the hot apply kernel free of any wrapper-side passes over x / out.
    return theta_full[:k, :k]


# ---------------------------------------------------------------------------
# Batched apply kernel: out = x @ theta  (pure MXU, streamed over batch tiles)
# ---------------------------------------------------------------------------
def _apply_kernel(x_ref, theta_ref, o_ref):
    # x_ref: (tb, k); theta_ref: (k, k), VMEM-resident across all grid steps.
    # Mosaic masks the unaligned K = N = k contraction internally; the kernel
    # stays a single MXU matmul per tile with fully pipelined tile DMA.
    o_ref[...] = jnp.dot(
        x_ref[...], theta_ref[...], preferred_element_type=jnp.float32
    ).astype(o_ref.dtype)


def noise_layer_apply(x, theta, *, block_b=4096):
    """x: (B, k), theta: (k, k) from prepare_theta. Returns (B, k) float32."""
    B, k = x.shape
    assert theta.shape == (k, k)
    x = x.astype(jnp.float32)
    theta = theta.astype(jnp.float32)

    # Batch tiling: balance tiles (avoids up-to-2x remainder waste), keep >= 2
    # tiles for big batches so 'parallel' sharding uses both v7x TensorCores,
    # and round the tile to 8 sublanes.  No HBM-side padding of x / out.
    n_tiles = max(1, pl.cdiv(B, block_b))
    if n_tiles == 1 and B >= 2048:
        n_tiles = 2
    tb = min(_round_up(pl.cdiv(B, n_tiles), 8), _round_up(B, 8))
    grid = (pl.cdiv(B, tb),)

    return pl.pallas_call(
        _apply_kernel,
        out_shape=jax.ShapeDtypeStruct((B, k), jnp.float32),
        grid_spec=pltpu.PrefetchScalarGridSpec(
            num_scalar_prefetch=0,
            grid=grid,
            in_specs=[
                # Last dims equal the true array dims (legal even when k is not
                # a multiple of 128); batch tiles are auto-pipelined
                # (prefetch i+1 / writeback i-1 overlap compute on i).
                pl.BlockSpec((tb, k), lambda i: (i, 0)),
                # theta: same block every step -> stays VMEM-resident.
                pl.BlockSpec((k, k), lambda i: (0, 0)),
            ],
            out_specs=pl.BlockSpec((tb, k), lambda i: (i, 0)),
        ),
        compiler_params=pltpu.CompilerParams(
            dimension_semantics=("parallel",)),
        cost_estimate=pl.CostEstimate(
            flops=2 * B * k * k,
            transcendentals=0,
            bytes_accessed=4 * (2 * B * k + k * k)),
    )(x, theta)


@functools.partial(jax.jit, static_argnames=("block_b",))
def noise_layer_forward(x, w, *, block_b=4096):
    """Full NoiseLayer forward: out = x @ softmax(W^T, axis=0)."""
    return noise_layer_apply(x, prepare_theta(w), block_b=block_b)


def noise_layer_ref(x, w):
    k = w.shape[0]
    theta = jnp.eye(k, dtype=x.dtype) @ w.T
    theta = jax.nn.softmax(theta, axis=0)
    return x @ theta


if __name__ == "__main__":
    key = jax.random.PRNGKey(0)
    kx, kw = jax.random.split(key)

    B, k = 16, 100  # module default k=100; small batch for the demo
    x = jax.random.normal(kx, (B, k), dtype=jnp.float32)
    # Deterministic "theta" parameter for the Linear layer (no checkpoint load).
    theta_param = jax.random.normal(kw, (k, k), dtype=jnp.float32) * 0.1

    out = jax.block_until_ready(noise_layer_forward(x, theta_param))
    ref = noise_layer_ref(x, theta_param)

    assert out.shape == (B, k)
    assert jnp.allclose(out, ref, atol=1e-3, rtol=1e-3), "mismatch vs reference"

    print("KERNEL_OK")
</pallas_src>

<mosaic_0001>
module attributes {stable_mosaic.version = 11 : i64} {
  func.func @_apply_kernel(%arg0: i32, %arg1: memref<16x100xf32, #tpu.memory_space<vmem>>, %arg2: memref<100x100xf32, #tpu.memory_space<vmem>>, %arg3: memref<16x100xf32, #tpu.memory_space<vmem>>) attributes {dimension_semantics = [#tpu.dimension_semantics<parallel>], iteration_bounds = array<i64: 1>, scalar_prefetch = 0 : i64, scratch_operands = 0 : i64, tpu.core_type = #tpu.core_type<tc>, window_params = [{transform_indices = @transform_0, window_bounds = array<i64: 16, 100>}, {pipeline_mode = #tpu.pipeline_mode<synchronous>, transform_indices = @transform_1, window_bounds = array<i64: 100, 100>}, {transform_indices = @transform_2, window_bounds = array<i64: 16, 100>}]} {
    %c0 = arith.constant 0 : index
    %c0_0 = arith.constant 0 : index
    %0 = vector.load %arg1[%c0, %c0_0] : memref<16x100xf32, #tpu.memory_space<vmem>>, vector<16x100xf32>
    %c0_1 = arith.constant 0 : index
    %c0_2 = arith.constant 0 : index
    %1 = vector.load %arg2[%c0_1, %c0_2] : memref<100x100xf32, #tpu.memory_space<vmem>>, vector<100x100xf32>
    %cst = arith.constant dense<0.000000e+00> : vector<16x100xf32>
    %2 = tpu.matmul %0, %1, %cst {dimension_numbers = #tpu.dot_dimension_numbers<[1], [0], [0], [1], [0, 0, 1, 1], [], []>} : vector<16x100xf32>, vector<100x100xf32>, vector<16x100xf32> -> vector<16x100xf32>
    %c0_3 = arith.constant 0 : index
    %c0_4 = arith.constant 0 : index
    %3 = vector.load %arg3[%c0_3, %c0_4] : memref<16x100xf32, #tpu.memory_space<vmem>>, vector<16x100xf32>
    tpu.vector_store %arg3[%c0_3, %c0_4], %2 {strides = array<i32>} : memref<16x100xf32, #tpu.memory_space<vmem>>, vector<16x100xf32>,
    return
  }
  func.func @transform_0(%arg0: i32) -> (i32, i32) {
    %c0_i32 = arith.constant 0 : i32
    %c0_i32_0 = arith.constant 0 : i32
    return %arg0, %c0_i32 : i32, i32
  }
  func.func @transform_1(%arg0: i32) -> (i32, i32) {
    %c0_i32 = arith.constant 0 : i32
    %c0_i32_0 = arith.constant 0 : i32
    %c0_i32_1 = arith.constant 0 : i32
    return %c0_i32, %c0_i32_0 : i32, i32
  }
  func.func @transform_2(%arg0: i32) -> (i32, i32) {
    %c0_i32 = arith.constant 0 : i32
    %c0_i32_0 = arith.constant 0 : i32
    return %arg0, %c0_i32 : i32, i32
  }
}

module attributes {stable_mosaic.version = 11 : i64} {
  func.func @_theta_kernel(%arg0: memref<128x128xf32, #tpu.memory_space<vmem>>, %arg1: memref<128x128xf32, #tpu.memory_space<vmem>>) attributes {dimension_semantics = [], scalar_prefetch = 0 : i64, scratch_operands = 0 : i64, tpu.core_type = #tpu.core_type<tc>} {
    %c0 = arith.constant 0 : index
    %c0_0 = arith.constant 0 : index
    %0 = vector.load %arg0[%c0, %c0_0] : memref<128x128xf32, #tpu.memory_space<vmem>>, vector<128x128xf32>
    %cst = arith.constant dense<0xFF800000> : vector<128xf32>
    %1 = vector.multi_reduction <maximumf>, %0, %cst [1] : vector<128x128xf32> to vector<128xf32>
    %2 = vector.shape_cast %1 : vector<128xf32> to vector<128x1xf32>
    %3 = vector.broadcast %2 : vector<128x1xf32> to vector<128x128xf32>
    %4 = arith.subf %0, %3 : vector<128x128xf32>
    %5 = math.exp %4 : vector<128x128xf32>
    %cst_1 = arith.constant dense<0.000000e+00> : vector<128xf32>
    %6 = vector.multi_reduction <add>, %5, %cst_1 [1] : vector<128x128xf32> to vector<128xf32>
    %7 = vector.shape_cast %6 : vector<128xf32> to vector<128x1xf32>
    %8 = vector.broadcast %7 : vector<128x1xf32> to vector<128x128xf32>
    %9 = arith.divf %5, %8 : vector<128x128xf32>
    %10 = tpu.transpose %9, [1, 0] : vector<128x128xf32> -> vector<128x128xf32>
    %c0_2 = arith.constant 0 : index
    %c0_3 = arith.constant 0 : index
    %11 = vector.load %arg1[%c0_2, %c0_3] : memref<128x128xf32, #tpu.memory_space<vmem>>, vector<128x128xf32>
    tpu.vector_store %arg1[%c0_2, %c0_3], %10 {strides = array<i32>} : memref<128x128xf32, #tpu.memory_space<vmem>>, vector<128x128xf32>,
    return
  }
}

</mosaic_0001>

<bundles_post_ra>
// kernel: noise_layer_forward.2
= control target key start
LH: loop header
LB: loop body
LE: loop exit
PB: predicated region body
PF: predicated region fallthrough
CT: control target
= control target key end

     0   :  { %s470_s0 = inlined_call_operand.vmem [shape: f32[128,128], index: 0, kind: input, shape index: {}]   ;;  %s471_s1 = inlined_call_operand.vmem [shape: f32[128,128], index: 1, kind: output, shape index: {}]  }
   0x1   :  { %v8_v0 = vld [vmem:[%s470_s0] sm:$0xff]  ;;  %v10_v1 = vld [vmem:[%s470_s0 + $0x10] sm:$0xff]  ;;  %v9_v2 = vld [vmem:[%s470_s0 + $0x8] sm:$0xff] }
   0x2   :  { %24 = vmax.xlane.f32.xlu0 %v8_v0  ;;  %28 = vmax.xlane.f32.xlu1 %v10_v1  ;;  %v11_v3 = vld [vmem:[%s470_s0 + $0x18] sm:$0xff]  ;;  %v12_v4 = vld [vmem:[%s470_s0 + $0x20] sm:$0xff]  ;;  %v13_v5 = vld [vmem:[%s470_s0 + $0x28] sm:$0xff] }
   0x3   :  { %v14_v6 = vld [vmem:[%s470_s0 + $0x30] sm:$0xff]  ;;  %v15_v7 = vld [vmem:[%s470_s0 + $0x38] sm:$0xff]  ;;  %v16_v8 = vld [vmem:[%s470_s0 + $0x40] sm:$0xff] }
   0x4   :  { %v17_v9 = vld [vmem:[%s470_s0 + $0x48] sm:$0xff]  ;;  %v18_v10 = vld [vmem:[%s470_s0 + $0x50] sm:$0xff]  ;;  %v19_v11 = vld [vmem:[%s470_s0 + $0x58] sm:$0xff] }
   0x5   :  { %v333_v12 = vld [vmem:[%s470_s0 + $0x60] sm:$0xff]  ;;  %v338_v13 = vld [vmem:[%s470_s0 + $0x68] sm:$0xff]  ;;  %v345_v14 = vld [vmem:[%s470_s0 + $0x70] sm:$0xff] }
   0x6   :  { %26 = vmax.xlane.f32.xlu0 %v9_v2  ;;  %30 = vmax.xlane.f32.xlu1 %v11_v3  ;;  %v350_v15 = vld [vmem:[%s470_s0 + $0x78] sm:$0xff] }
   0xa   :  { %32 = vmax.xlane.f32.xlu0 %v12_v4  ;;  %34 = vmax.xlane.f32.xlu1 %v13_v5 }
   0xe   :  { %36 = vmax.xlane.f32.xlu0 %v14_v6  ;;  %38 = vmax.xlane.f32.xlu1 %v15_v7 }
  0x12   :  { %40 = vmax.xlane.f32.xlu0 %v16_v8  ;;  %42 = vmax.xlane.f32.xlu1 %v17_v9 }
  0x16   :  { %44 = vmax.xlane.f32.xlu0 %v18_v10  ;;  %46 = vmax.xlane.f32.xlu1 %v19_v11 }
  0x1a   :  { %48 = vmax.xlane.f32.xlu0 %v333_v12  ;;  %50 = vmax.xlane.f32.xlu1 %v338_v13 }
  0x1e   :  { %52 = vmax.xlane.f32.xlu0 %v345_v14  ;;  %54 = vmax.xlane.f32.xlu1 %v350_v15 }
  0x8b   :  { %v25_v16 = vpop.xlane.xlu0 %24  ;;  %v29_v17 = vpop.xlane.xlu1 %28 }
  0x8c   :  { %v56_v18 = vsub.f32 %v8_v0, %v25_v16  ;;  %v58_v19 = vsub.f32 %v10_v1, %v29_v17 }
  0x8e   :  { %v72_v20 = vmul.f32 1.442695, %v56_v18  ;;  %v76_v21 = vmul.f32 1.442695, %v58_v19 }
  0x8f   :  { %v27_v22 = vpop.xlane.xlu0 %26  ;;  %v31_v23 = vpop.xlane.xlu1 %30 }
  0x90   :  { %220 = vpow2.f32 %v72_v20  ;;  %v57_v24 = vsub.f32 %v9_v2, %v27_v22  ;;  %v59_v25 = vsub.f32 %v11_v3, %v31_v23 }
  0x91   :  { %222 = vpow2.f32 %v76_v21 }
  0x92   :  { %v74_v26 = vmul.f32 1.442695, %v57_v24  ;;  %v78_v27 = vmul.f32 1.442695, %v59_v25 }
  0x93   :  { %v33_v28 = vpop.xlane.xlu0 %32  ;;  %v35_v29 = vpop.xlane.xlu1 %34 }
  0x94   :  { %224 = vpow2.f32 %v74_v26  ;;  %v60_v30 = vsub.f32 %v12_v4, %v33_v28  ;;  %v61_v31 = vsub.f32 %v13_v5, %v35_v29 }
  0x95   :  { %226 = vpow2.f32 %v78_v27 }
  0x96   :  { %v80_v32 = vmul.f32 1.442695, %v60_v30  ;;  %v82_v33 = vmul.f32 1.442695, %v61_v31 }
  0x97   :  { %v37_v34 = vpop.xlane.xlu0 %36  ;;  %v39_v35 = vpop.xlane.xlu1 %38 }
  0x98   :  { %228 = vpow2.f32 %v80_v32  ;;  %v62_v36 = vsub.f32 %v14_v6, %v37_v34  ;;  %v63_v37 = vsub.f32 %v15_v7, %v39_v35 }
  0x99   :  { %230 = vpow2.f32 %v82_v33 }
  0x9a   :  { %v84_v38 = vmul.f32 1.442695, %v62_v36  ;;  %v86_v39 = vmul.f32 1.442695, %v63_v37 }
  0x9b   :  { %v41_v40 = vpop.xlane.xlu0 %40  ;;  %v43_v41 = vpop.xlane.xlu1 %42 }
  0x9c   :  { %232 = vpow2.f32 %v84_v38  ;;  %v64_v42 = vsub.f32 %v16_v8, %v41_v40  ;;  %v65_v43 = vsub.f32 %v17_v9, %v43_v41 }
  0x9d   :  { %v354_v44 = vpop.eup %220  ;;  %234 = vpow2.f32 %v86_v39 }
  0x9e   :  { %v88_v45 = vmul.f32 1.442695, %v64_v42  ;;  %104 = vadd.xlane.f32.xlu0 %v354_v44  ;;  %v90_v46 = vmul.f32 1.442695, %v65_v43  ;;  %v357_v47 = vpop.eup %222 }
  0x9f   :  { %v45_v48 = vpop.xlane.xlu0 %44  ;;  %v47_v49 = vpop.xlane.xlu1 %46 }
  0xa0   :  { %236 = vpow2.f32 %v88_v45  ;;  %v66_v50 = vsub.f32 %v18_v10, %v45_v48  ;;  %v67_v51 = vsub.f32 %v19_v11, %v47_v49 }
  0xa1   :  { %v359_v52 = vpop.eup %224  ;;  %238 = vpow2.f32 %v90_v46 }
  0xa2   :  { %v92_v53 = vmul.f32 1.442695, %v66_v50  ;;  %108 = vadd.xlane.f32.xlu0 %v357_v47  ;;  %106 = vadd.xlane.f32.xlu1 %v359_v52  ;;  %v94_v54 = vmul.f32 1.442695, %v67_v51  ;;  %v363_v55 = vpop.eup %226 }
  0xa3   :  { %v49_v56 = vpop.xlane.xlu0 %48  ;;  %v51_v57 = vpop.xlane.xlu1 %50 }
  0xa4   :  { %240 = vpow2.f32 %v92_v53  ;;  %v68_v58 = vsub.f32 %v333_v12, %v49_v56  ;;  %v69_v59 = vsub.f32 %v338_v13, %v51_v57 }
  0xa5   :  { %v367_v60 = vpop.eup %228  ;;  %242 = vpow2.f32 %v94_v54 }
  0xa6   :  { %v96_v61 = vmul.f32 1.442695, %v68_v58  ;;  %110 = vadd.xlane.f32.xlu1 %v363_v55  ;;  %112 = vadd.xlane.f32.xlu0 %v367_v60  ;;  %v98_v62 = vmul.f32 1.442695, %v69_v59  ;;  %v371_v63 = vpop.eup %230 }
  0xa7   :  { %v53_v0 = vpop.xlane.xlu0 %52  ;;  %v55_v1 = vpop.xlane.xlu1 %54 }
  0xa8   :  { %244 = vpow2.f32 %v96_v61  ;;  %v70_v2 = vsub.f32 %v345_v14, %v53_v0  ;;  %v71_v3 = vsub.f32 %v350_v15, %v55_v1 }
  0xa9   :  { %v375_v4 = vpop.eup %232  ;;  %246 = vpow2.f32 %v98_v62 }
  0xaa   :  { %v100_v5 = vmul.f32 1.442695, %v70_v2  ;;  %114 = vadd.xlane.f32.xlu1 %v371_v63  ;;  %116 = vadd.xlane.f32.xlu0 %v375_v4  ;;  %v102_v6 = vmul.f32 1.442695, %v71_v3  ;;  %v379_v7 = vpop.eup %234 }
  0xac   :  { %248 = vpow2.f32 %v100_v5 }
  0xad   :  { %v381_v8 = vpop.eup %236  ;;  %250 = vpow2.f32 %v102_v6 }
  0xae   :  { %118 = vadd.xlane.f32.xlu1 %v379_v7  ;;  %120 = vadd.xlane.f32.xlu0 %v381_v8  ;;  %v385_v9 = vpop.eup %238 }
  0xb1   :  { %v387_v10 = vpop.eup %240 }
  0xb2   :  { %122 = vadd.xlane.f32.xlu1 %v385_v9  ;;  %124 = vadd.xlane.f32.xlu0 %v387_v10  ;;  %v391_v11 = vpop.eup %242 }
  0xb5   :  { %v393_v12 = vpop.eup %244 }
  0xb6   :  { %126 = vadd.xlane.f32.xlu1 %v391_v11  ;;  %128 = vadd.xlane.f32.xlu0 %v393_v12  ;;  %v397_v13 = vpop.eup %246 }
  0xb9   :  { %v399_v14 = vpop.eup %248 }
  0xba   :  { %130 = vadd.xlane.f32.xlu1 %v397_v13  ;;  %132 = vadd.xlane.f32.xlu0 %v399_v14  ;;  %v403_v15 = vpop.eup %250 }
  0xbe   :  { %134 = vadd.xlane.f32.xlu1 %v403_v15 }
 0x127   :  { %v105_v16 = vpop.xlane.xlu0 %104 }
 0x128   :  { %252 = vrcp.f32 %v105_v16 }
 0x12b   :  { %v107_v17 = vpop.xlane.xlu1 %106  ;;  %v109_v18 = vpop.xlane.xlu0 %108 }
 0x12c   :  { %254 = vrcp.f32 %v107_v17 }
 0x12d   :  { %256 = vrcp.f32 %v109_v18 }
 0x12f   :  { %v111_v19 = vpop.xlane.xlu1 %110  ;;  %v113_v20 = vpop.xlane.xlu0 %112 }
 0x130   :  { %258 = vrcp.f32 %v111_v19 }
 0x131   :  { %260 = vrcp.f32 %v113_v20 }
 0x133   :  { %v115_v23 = vpop.xlane.xlu1 %114  ;;  %v117_v27 = vpop.xlane.xlu0 %116 }
 0x134   :  { %262 = vrcp.f32 %v115_v23 }
 0x135   :  { %v253_v21 = vpop.eup %252  ;;  %264 = vrcp.f32 %v117_v27 }
 0x136   :  { %v137_v22 = vmul.f32 %v253_v21, %v354_v44 }
 0x137   :  { %v119_v30 = vpop.xlane.xlu1 %118  ;;  %v121_v33 = vpop.xlane.xlu0 %120 }
 0x138   :  { %168 = vxpose.xlu0.b32.start [1/16] %v137_v22, 128  ;;  %266 = vrcp.f32 %v119_v30 }
 0x139   :  { %v255_v24 = vpop.eup %254  ;;  %268 = vrcp.f32 %v121_v33 }
 0x13a   :  { %v139_v25 = vmul.f32 %v255_v24, %v359_v52  ;;  %v257_v26 = vpop.eup %256 }
 0x13b   :  { %v141_v28 = vmul.f32 %v257_v26, %v357_v47  ;;  %v123_v36 = vpop.xlane.xlu1 %122  ;;  %v125_v39 = vpop.xlane.xlu0 %124 }
 0x13c   :  { %169 = vxpose.xlu0.b32.cont [2/16] %v139_v25, 128  ;;  %270 = vrcp.f32 %v123_v36 }
 0x13d   :  { %v259_v29 = vpop.eup %258  ;;  %272 = vrcp.f32 %v125_v39 }
 0x13e   :  { %v143_v31 = vmul.f32 %v259_v29, %v363_v55  ;;  %v261_v32 = vpop.eup %260 }
 0x13f   :  { %v145_v34 = vmul.f32 %v261_v32, %v367_v60  ;;  %v127_v42 = vpop.xlane.xlu1 %126  ;;  %v129_v45 = vpop.xlane.xlu0 %128 }
 0x140   :  { %170 = vxpose.xlu0.b32.cont [3/16] %v141_v28, 128  ;;  %274 = vrcp.f32 %v127_v42 }
 0x141   :  { %v263_v35 = vpop.eup %262  ;;  %276 = vrcp.f32 %v129_v45 }
 0x142   :  { %v147_v37 = vmul.f32 %v263_v35, %v371_v63  ;;  %v265_v38 = vpop.eup %264 }
 0x143   :  { %v149_v40 = vmul.f32 %v265_v38, %v375_v4  ;;  %v131_v48 = vpop.xlane.xlu1 %130  ;;  %v133_v51 = vpop.xlane.xlu0 %132 }
 0x144   :  { %171 = vxpose.xlu0.b32.cont [4/16] %v143_v31, 128  ;;  %278 = vrcp.f32 %v131_v48 }
 0x145   :  { %v267_v41 = vpop.eup %266  ;;  %280 = vrcp.f32 %v133_v51 }
 0x146   :  { %v151_v43 = vmul.f32 %v267_v41, %v379_v7  ;;  %v269_v44 = vpop.eup %268 }
 0x147   :  { %v153_v46 = vmul.f32 %v269_v44, %v381_v8  ;;  %v135_v54 = vpop.xlane.xlu1 %134 }
 0x148   :  { %172 = vxpose.xlu0.b32.cont [5/16] %v145_v34, 128  ;;  %282 = vrcp.f32 %v135_v54 }
 0x149   :  { %v271_v47 = vpop.eup %270 }
 0x14a   :  { %v155_v49 = vmul.f32 %v271_v47, %v385_v9  ;;  %v273_v50 = vpop.eup %272 }
 0x14b   :  { %v157_v52 = vmul.f32 %v273_v50, %v387_v10 }
 0x14c   :  { %173 = vxpose.xlu0.b32.cont [6/16] %v147_v37, 128 }
 0x14d   :  { %v275_v53 = vpop.eup %274 }
 0x14e   :  { %v159_v55 = vmul.f32 %v275_v53, %v391_v11  ;;  %v277_v56 = vpop.eup %276 }
 0x14f   :  { %v161_v57 = vmul.f32 %v277_v56, %v393_v12 }
 0x150   :  { %174 = vxpose.xlu0.b32.cont [7/16] %v149_v40, 128 }
 0x151   :  { %v279_v58 = vpop.eup %278 }
 0x152   :  { %v163_v59 = vmul.f32 %v279_v58, %v397_v13  ;;  %v281_v60 = vpop.eup %280 }
 0x153   :  { %v165_v61 = vmul.f32 %v281_v60, %v399_v14 }
 0x154   :  { %175 = vxpose.xlu0.b32.cont [8/16] %v151_v43, 128 }
 0x155   :  { %v283_v62 = vpop.eup %282 }
 0x156   :  { %v167_v63 = vmul.f32 %v283_v62, %v403_v15 }
 0x158   :  { %176 = vxpose.xlu0.b32.cont [9/16] %v153_v46, 128 }
 0x15c   :  { %177 = vxpose.xlu0.b32.cont [10/16] %v155_v49, 128 }
 0x160   :  { %178 = vxpose.xlu0.b32.cont [11/16] %v157_v52, 128 }
 0x164   :  { %179 = vxpose.xlu0.b32.cont [12/16] %v159_v55, 128 }
 0x168   :  { %180 = vxpose.xlu0.b32.cont [13/16] %v161_v57, 128 }
 0x16c   :  { %181 = vxpose.xlu0.b32.cont [14/16] %v163_v59, 128 }
 0x170   :  { %182 = vxpose.xlu0.b32.cont [15/16] %v165_v61, 128 }
 0x174   :  { %183 = vxpose.xlu0.b32.end [16/16] %v167_v63, 128 }
 0x1b4   :  { %v184_v0 = vpop.trf.xlu0 }
 0x1b5   :  { %200 = vst [vmem:[%s471_s1] sm:$0xff] %v184_v0 }
 0x1b8   :  { %v185_v1 = vpop.trf.xlu0 }
 0x1b9   :  { %201 = vst [vmem:[%s471_s1 + $0x8] sm:$0xff] %v185_v1 }
 0x1bc   :  { %v186_v2 = vpop.trf.xlu0 }
 0x1bd   :  { %202 = vst [vmem:[%s471_s1 + $0x10] sm:$0xff] %v186_v2 }
 0x1c0   :  { %v187_v3 = vpop.trf.xlu0 }
 0x1c1   :  { %203 = vst [vmem:[%s471_s1 + $0x18] sm:$0xff] %v187_v3 }
 0x1c4   :  { %v188_v4 = vpop.trf.xlu0 }
 0x1c5   :  { %204 = vst [vmem:[%s471_s1 + $0x20] sm:$0xff] %v188_v4 }
 0x1c8   :  { %v189_v5 = vpop.trf.xlu0 }
 0x1c9   :  { %205 = vst [vmem:[%s471_s1 + $0x28] sm:$0xff] %v189_v5 }
 0x1cc   :  { %v190_v6 = vpop.trf.xlu0 }
 0x1cd   :  { %206 = vst [vmem:[%s471_s1 + $0x30] sm:$0xff] %v190_v6 }
 0x1d0   :  { %v191_v7 = vpop.trf.xlu0 }
 0x1d1   :  { %207 = vst [vmem:[%s471_s1 + $0x38] sm:$0xff] %v191_v7 }
 0x1d4   :  { %v192_v8 = vpop.trf.xlu0 }
 0x1d5   :  { %208 = vst [vmem:[%s471_s1 + $0x40] sm:$0xff] %v192_v8 }
 0x1d8   :  { %v193_v9 = vpop.trf.xlu0 }
 0x1d9   :  { %209 = vst [vmem:[%s471_s1 + $0x48] sm:$0xff] %v193_v9 }
 0x1dc   :  { %v194_v10 = vpop.trf.xlu0 }
 0x1dd   :  { %210 = vst [vmem:[%s471_s1 + $0x50] sm:$0xff] %v194_v10 }
 0x1e0   :  { %v195_v11 = vpop.trf.xlu0 }
 0x1e1   :  { %211 = vst [vmem:[%s471_s1 + $0x58] sm:$0xff] %v195_v11 }
 0x1e4   :  { %v196_v12 = vpop.trf.xlu0 }
 0x1e5   :  { %212 = vst [vmem:[%s471_s1 + $0x60] sm:$0xff] %v196_v12 }
 0x1e8   :  { %v197_v13 = vpop.trf.xlu0 }
 0x1e9   :  { %213 = vst [vmem:[%s471_s1 + $0x68] sm:$0xff] %v197_v13 }
 0x1ec   :  { %v198_v14 = vpop.trf.xlu0 }
 0x1ed   :  { %214 = vst [vmem:[%s471_s1 + $0x70] sm:$0xff] %v198_v14 }
 0x1f0   :  { %v199_v15 = vpop.trf.xlu0 }
 0x1f1   :  { %215 = vst [vmem:[%s471_s1 + $0x78] sm:$0xff] %v199_v15 }

// kernel: noise_layer_forward.3
= control target key start
LH: loop header
LB: loop body
LE: loop exit
PB: predicated region body
PF: predicated region fallthrough
CT: control target
= control target key end

     0   :  { %vm34_vm0 = vcmask 1043456   ;;  %vm27_vm1 = vcmask 818176   ;;  %s273_s0 = inlined_call_operand.vmem [shape: f32[16,100], index: 0, kind: input, shape index: {}]   ;;  %s274_s1 = inlined_call_operand.vmem [shape: f32[100,100], index: 1, kind: input, shape index: {}]   ;;  %s275_s2 = inlined_call_operand.hbm [shape: f32[16,100], index: 2, kind: output, shape index: {}]  }
   0x1   :  { %v26_v0 = vld [vmem:[%s274_s1 + $0x60] sm:$0xf]  ;;  %v25_v1 = vld [vmem:[%s274_s1 + $0x58] sm:$0xff]  ;;  %v24_v2 = vld [vmem:[%s274_s1 + $0x50] sm:$0xff] }
   0x2   :  { %149 = vmatprep.subr.msk.mxu0 %vm34_vm0, %v26_v0  ;;  %v23_v3 = vld [vmem:[%s274_s1 + $0x48] sm:$0xff]  ;;  %v12_v4 = vld [vmem:[%s273_s0] sm:$0xff] }
   0x3   :  { %150 = vmatpush3.msk.msra.mxu0 %vm34_vm0, %v26_v0  ;;  %175 = vmatprep.mubr.msk.f32.mxu0 %vm27_vm1, %v12_v4 }
   0x4   :  { %151 = vmatprep.subr.mxu0 %v25_v1 }
   0x5   :  { %152 = vmatpush3.msra.mxu0 %v25_v1 }
   0x6   :  { %153 = vmatprep.subr.mxu0 %v24_v2 }
   0x7   :  { %7 = vsyncpa [#allocation3], 0  ;;  %154 = vmatpush3.msra.mxu0 %v24_v2  ;;  %v22_v5 = vld [vmem:[%s274_s1 + $0x40] sm:$0xff]  ;;  %v21_v6 = vld [vmem:[%s274_s1 + $0x38] sm:$0xff]  ;;  %s203_s11 = smov [#allocation2]  }
   0x8   :  { %155 = vmatprep.subr.mxu0 %v23_v3  ;;  %v20_v7 = vld [vmem:[%s274_s1 + $0x30] sm:$0xff]  ;;  %v19_v8 = vld [vmem:[%s274_s1 + $0x28] sm:$0xff]  ;;  %v18_v9 = vld [vmem:[%s274_s1 + $0x20] sm:$0xff]  ;;  %s120_s12 = sshll.u32 %s203_s11, 4  ;;  %s121_s12 = int_to_ptr.vmem [resolvable:$true] %s120_s12 }
   0x9   :  { %156 = vmatpush3.msra.mxu0 %v23_v3  ;;  %v17_v10 = vld [vmem:[%s274_s1 + $0x18] sm:$0xff]  ;;  %v16_v11 = vld [vmem:[%s274_s1 + $0x10] sm:$0xff]  ;;  %v15_v12 = vld [vmem:[%s274_s1 + $0x8] sm:$0xff]  ;;  %p186_p1 = scmp.lt.s32.totalorder %s121_s12, %s121_s12 }
   0xa   :  { %157 = vmatprep.subr.mxu0 %v22_v5  ;;  %v14_v13 = vld [vmem:[%s274_s1] sm:$0xff]  ;;  %v13_v14 = vld [vmem:[%s273_s0 + $0x8] sm:$0xff]  ;;  %s181_s1 = scalar_lea.vmem %s121_s12, 256 }
   0xb   :  { %158 = vmatpush3.msra.mxu0 %v22_v5  ;;  %p182_p0 = scmp.ne.s32.totalorder %s121_s12, %s181_s1  ;;  %p187_p2 = scmp.lt.s32.totalorder %s181_s1, %s181_s1 }
   0xc   :  { %159 = vmatprep.subr.mxu0 %v21_v6 }
   0xd   :  { %160 = vmatpush3.msra.mxu0 %v21_v6  ;;  %p188_p3 = por %p187_p2, %p186_p1 }
   0xe   :  { %161 = vmatprep.subr.mxu0 %v20_v7 }
   0xf   :  { %162 = vmatpush3.msra.mxu0 %v20_v7  ;;  %p189_p4 = pnand %p188_p3, %p182_p0 }
  0x10   :  { %163 = vmatprep.subr.mxu0 %v19_v8 }
  0x11   :  { %164 = vmatpush3.msra.mxu0 %v19_v8 }
  0x12   :  { %165 = vmatprep.subr.mxu0 %v18_v9 }
  0x13   :  { %166 = vmatpush3.msra.mxu0 %v18_v9 }
  0x14   :  { %167 = vmatprep.subr.mxu0 %v17_v10 }
  0x15   :  { %168 = vmatpush3.msra.mxu0 %v17_v10 }
  0x16   :  { %169 = vmatprep.subr.mxu0 %v16_v11 }
  0x17   :  { %170 = vmatpush3.msra.mxu0 %v16_v11 }
  0x18   :  { %171 = vmatprep.subr.mxu0 %v15_v12 }
  0x19   :  { %172 = vmatpush3.msra.mxu0 %v15_v12 }
  0x1a   :  { %173 = vmatprep.subr.mxu0 %v14_v13 }
  0x1b   :  { %174 = vmatpush3.msra.mxu0 %v14_v13 }
  0x1c   :  { %176 = vmatmul.mubr.msk.f32.vlgmr.msra.gmra.mxu0 %vm27_vm1, %v13_v14 }
  0xdc   :  { %v177_v15 = vpop.f32.mrf.mxu0 }
  0xdd   :  { %114 = vst.msk [vmem:[#allocation2 + $0x8] sm:$0xff] %vm27_vm1, %v177_v15 }
  0xde   :  { %v104_v16 = vpop.f32.mrf.mxu0 }
  0xdf   :  { %113 = vst.msk [vmem:[#allocation2] sm:$0xff] %vm27_vm1, %v104_v16 }
  0xe0   :  { %192 = shalt.err (!%p189_p4)
}
  0xe1   :  { %s204_s0 = smov 128   ;;  %s205_s13 = smov 8  }
  0xe2   :  { %126 = dma.vmem_to_hbm [thread:$0]  %s121_s12, 256, %s275_s2, [#allocation3], %s204_s0, %s204_s0, %s205_s13  }
  0xe3   :  { %201 = dma.done.wait [#allocation3], 256  }
  0xe4   :  { %202 = vsyncadd [#allocation3], 4294967040 }
  0xe5   :  { %130 = vsyncpa [#allocation3], 1 }

</bundles_post_ra>
